<compile_context>
chip_gen: v6e
topology: v6e:2x2x1
jax: 0.10.0
libtpu: 0.0.40
codegen_flags: <defaults>
</compile_context>

<pallas_src>
import functools

import jax
import jax.numpy as jnp
from jax.experimental import pallas as pl
from jax.experimental.pallas import tpu as pltpu

_LANES = 128           # vreg lane width
_MAX_TILE_ROWS = 4096  # 4096 x 128 x 4B = 2 MiB/buffer -> 8 MiB total (v7x-safe)
_MAX_MASK_COLS = 8     # for C <= this, stream raw (B,C) data + in-kernel mask


def _round_up(x: int, m: int) -> int:
    return ((x + m - 1) // m) * m


def _xhi_loss_kernel(p_ref, t_ref, out_ref, acc_ref, *, inv_n, col_stride,
                     tile_rows):
    i = pl.program_id(0)

    @pl.when(i == 0)
    def _init():
        acc_ref[...] = jnp.zeros_like(acc_ref)

    # Tiles are float32; zero-padded tail elements contribute exactly 0.
    d = p_ref[...] - t_ref[...]
    d2 = d * d

    if col_stride > 1:
        # Raw row-major (B, C) data streamed flat: keep only elements whose
        # global flat index is a multiple of C (i.e. column 0).  Padded
        # elements are zero in both operands so they contribute 0 regardless.
        row = jax.lax.broadcasted_iota(jnp.int32, (tile_rows, _LANES), 0)
        lane = jax.lax.broadcasted_iota(jnp.int32, (tile_rows, _LANES), 1)
        g = (i * tile_rows + row) * _LANES + lane
        d2 = jnp.where(g % col_stride == 0, d2, jnp.float32(0.0))

    # Vector accumulate: reduce only across sublane groups (pure VPU adds);
    # the cross-lane reduce is deferred to the finalize step.
    acc_ref[...] += d2.reshape(tile_rows // 8, 8, _LANES).sum(axis=0)

    @pl.when(i == pl.num_programs(0) - 1)
    def _finalize():
        # inv_n is a compile-time Python float = 1 / (true batch size).
        out_ref[0, 0] = jnp.sum(acc_ref[...]) * inv_n


def xhi_loss(predictions, targets, *, max_tile_rows: int = _MAX_TILE_ROWS,
             max_mask_cols: int = _MAX_MASK_COLS):
    """MSE between predictions[:, 0] and targets[:, 0] (PyTorch XHILoss.forward)."""
    assert predictions.shape == targets.shape
    assert predictions.ndim == 2
    B, C = predictions.shape

    if C <= max_mask_cols:
        # Stream the raw contiguous data; select column 0 in-kernel via mask.
        p_flat = predictions.reshape(-1).astype(jnp.float32)
        t_flat = targets.reshape(-1).astype(jnp.float32)
        col_stride = C
    else:
        # Many unused columns: slice column 0 in the wrapper instead of
        # DMAing C-1 dead columns through the kernel.
        p_flat = predictions[:, 0].astype(jnp.float32)
        t_flat = targets[:, 0].astype(jnp.float32)
        col_stride = 1

    n_elem = p_flat.shape[0]
    rows_needed = pl.cdiv(n_elem, _LANES)
    # Split rows as evenly as possible across tiles so zero-padding is bounded
    # by <8 rows per tile (never up to a whole max_tile_rows tile of dead DMA).
    n_tiles = pl.cdiv(rows_needed, max_tile_rows)
    tile_rows = _round_up(pl.cdiv(rows_needed, n_tiles), 8)
    rows = tile_rows * n_tiles
    pad = rows * _LANES - n_elem

    p_slab = jnp.pad(p_flat, (0, pad)).reshape(rows, _LANES)
    t_slab = jnp.pad(t_flat, (0, pad)).reshape(rows, _LANES)

    kernel = functools.partial(
        _xhi_loss_kernel,
        inv_n=float(1.0 / B),       # Python float: compile-time immediate
        col_stride=int(col_stride),  # Python int: compile-time constant
        tile_rows=int(tile_rows),
    )

    bytes_moved = 2 * rows * _LANES * 4 + 4
    cost = pl.CostEstimate(flops=3 * rows * _LANES, transcendentals=0,
                           bytes_accessed=bytes_moved)

    out = pl.pallas_call(
        kernel,
        out_shape=jax.ShapeDtypeStruct((1, 1), jnp.float32),
        grid_spec=pltpu.PrefetchScalarGridSpec(
            num_scalar_prefetch=0,
            grid=(n_tiles,),
            in_specs=[
                pl.BlockSpec((tile_rows, _LANES), lambda i: (i, 0)),
                pl.BlockSpec((tile_rows, _LANES), lambda i: (i, 0)),
            ],
            out_specs=pl.BlockSpec(memory_space=pltpu.MemorySpace.SMEM),
            scratch_shapes=[pltpu.VMEM((8, _LANES), jnp.float32)],
        ),
        compiler_params=pltpu.CompilerParams(
            dimension_semantics=("arbitrary",),  # batch axis is a reduction
        ),
        cost_estimate=cost,
    )(p_slab, t_slab)
    return out[0, 0]


if __name__ == "__main__":
    key = jax.random.PRNGKey(0)
    kp, kt = jax.random.split(key)

    # Small shapes consistent with the module: (batch, num_outputs) = (8, 2).
    B, C = 8, 2
    predictions = jax.random.normal(kp, (B, C), dtype=jnp.float32)
    targets = jax.random.normal(kt, (B, C), dtype=jnp.float32)

    loss = xhi_loss(predictions, targets)
    loss = jax.block_until_ready(loss)

    # Reference check (plain JAX, same semantics as torch nn.MSELoss on col 0).
    ref = jnp.mean((predictions[:, 0] - targets[:, 0]) ** 2)
    assert jnp.allclose(loss, ref, rtol=1e-6, atol=1e-6), (loss, ref)

    # Multi-step gridded accumulator path + non-multiple-of-128 element count
    # (small tiles force several grid steps), masked small-C path with C=5.
    kp2, kt2 = jax.random.split(jax.random.PRNGKey(1))
    B2, C2 = 2000, 5
    p2 = jax.random.normal(kp2, (B2, C2), dtype=jnp.float32)
    t2 = jax.random.normal(kt2, (B2, C2), dtype=jnp.float32)
    loss2 = jax.block_until_ready(xhi_loss(p2, t2, max_tile_rows=8))
    ref2 = jnp.mean((p2[:, 0] - t2[:, 0]) ** 2)
    assert jnp.allclose(loss2, ref2, rtol=1e-5, atol=1e-6), (loss2, ref2)

    # Large-C fallback path (wrapper-side column slice, no in-kernel mask).
    kp3, kt3 = jax.random.split(jax.random.PRNGKey(2))
    B3, C3 = 500, 300
    p3 = jax.random.normal(kp3, (B3, C3), dtype=jnp.float32)
    t3 = jax.random.normal(kt3, (B3, C3), dtype=jnp.float32)
    loss3 = jax.block_until_ready(xhi_loss(p3, t3))
    ref3 = jnp.mean((p3[:, 0] - t3[:, 0]) ** 2)
    assert jnp.allclose(loss3, ref3, rtol=1e-5, atol=1e-6), (loss3, ref3)

    print("KERNEL_OK")
</pallas_src>

<mosaic_0001>
module attributes {stable_mosaic.version = 11 : i64} {
  func.func @_xhi_loss_kernel(%arg0: i32, %arg1: memref<8x128xf32, #tpu.memory_space<vmem>>, %arg2: memref<8x128xf32, #tpu.memory_space<vmem>>, %arg3: memref<1x1xf32, #tpu.memory_space<smem>>, %arg4: memref<8x128xf32, #tpu.memory_space<vmem>>) attributes {dimension_semantics = [#tpu.dimension_semantics<arbitrary>], iteration_bounds = array<i64: 1>, scalar_prefetch = 0 : i64, scratch_operands = 1 : i64, tpu.core_type = #tpu.core_type<tc>, window_params = [{transform_indices = @transform_0, window_bounds = array<i64: 8, 128>}, {transform_indices = @transform_1, window_bounds = array<i64: 8, 128>}, {transform_indices = @transform_2, window_bounds = array<i64: 1, 1>}]} {
    %c0_i32 = arith.constant 0 : i32
    %0 = arith.cmpi eq, %arg0, %c0_i32 : i32
    %1 = arith.extui %0 : i1 to i32
    %c0_i32_0 = arith.constant 0 : i32
    %2 = arith.cmpi ne, %1, %c0_i32_0 : i32
    scf.if %2 {
      %cst_16 = arith.constant 0.000000e+00 : f32
      %43 = vector.broadcast %cst_16 : f32 to vector<8x128xf32>
      %c0_17 = arith.constant 0 : index
      %c0_18 = arith.constant 0 : index
      %44 = vector.load %arg4[%c0_17, %c0_18] : memref<8x128xf32, #tpu.memory_space<vmem>>, vector<8x128xf32>
      tpu.vector_store %arg4[%c0_17, %c0_18], %43 {strides = array<i32>} : memref<8x128xf32, #tpu.memory_space<vmem>>, vector<8x128xf32>,
    } else {
    }
    %c0 = arith.constant 0 : index
    %c0_1 = arith.constant 0 : index
    %3 = vector.load %arg1[%c0, %c0_1] : memref<8x128xf32, #tpu.memory_space<vmem>>, vector<8x128xf32>
    %c0_2 = arith.constant 0 : index
    %c0_3 = arith.constant 0 : index
    %4 = vector.load %arg2[%c0_2, %c0_3] : memref<8x128xf32, #tpu.memory_space<vmem>>, vector<8x128xf32>
    %5 = arith.subf %3, %4 : vector<8x128xf32>
    %6 = arith.mulf %5, %5 : vector<8x128xf32>
    %7 = tpu.iota {dimensions = array<i32: 0>} : vector<8x128xi32>
    %8 = tpu.iota {dimensions = array<i32: 1>} : vector<8x128xi32>
    %c8_i32 = arith.constant 8 : i32
    %9 = arith.muli %arg0, %c8_i32 : i32
    %10 = vector.broadcast %9 : i32 to vector<8x128xi32>
    %11 = arith.addi %10, %7 : vector<8x128xi32>
    %c128_i32 = arith.constant 128 : i32
    %12 = vector.broadcast %c128_i32 : i32 to vector<8x128xi32>
    %13 = arith.muli %11, %12 : vector<8x128xi32>
    %14 = arith.addi %13, %8 : vector<8x128xi32>
    %c2_i32 = arith.constant 2 : i32
    %c0_i32_4 = arith.constant 0 : i32
    %15 = arith.cmpi eq, %c2_i32, %c0_i32_4 : i32
    %c1_i32 = arith.constant 1 : i32
    %16 = arith.select %15, %c1_i32, %c2_i32 : i32
    %17 = vector.broadcast %16 : i32 to vector<8x128xi32>
    %18 = arith.remsi %14, %17 : vector<8x128xi32>
    %c0_i32_5 = arith.constant 0 : i32
    %19 = vector.broadcast %c0_i32_5 : i32 to vector<8x128xi32>
    %20 = arith.cmpi ne, %18, %19 : vector<8x128xi32>
    %c0_i32_6 = arith.constant 0 : i32
    %21 = vector.broadcast %c0_i32_6 : i32 to vector<8x128xi32>
    %22 = arith.cmpi slt, %18, %21 : vector<8x128xi32>
    %c0_i32_7 = arith.constant 0 : i32
    %23 = arith.cmpi slt, %16, %c0_i32_7 : i32
    %24 = vector.broadcast %23 : i1 to vector<8x128xi1>
    %25 = vector.broadcast %24 : vector<8x128xi1> to vector<8x128xi1>
    %26 = arith.xori %22, %25 : vector<8x128xi1>
    %27 = arith.andi %26, %20 : vector<8x128xi1>
    %28 = vector.broadcast %16 : i32 to vector<8x128xi32>
    %29 = arith.addi %18, %28 : vector<8x128xi32>
    %30 = arith.select %27, %29, %18 : vector<8x128xi1>, vector<8x128xi32>
    %c0_i32_8 = arith.constant 0 : i32
    %31 = vector.broadcast %c0_i32_8 : i32 to vector<8x128xi32>
    %32 = arith.cmpi eq, %30, %31 : vector<8x128xi32>
    %cst = arith.constant 0.000000e+00 : f32
    %33 = vector.broadcast %cst : f32 to vector<8x128xf32>
    %34 = arith.select %32, %6, %33 : vector<8x128xi1>, vector<8x128xf32>
    %c0_9 = arith.constant 0 : index
    %c0_10 = arith.constant 0 : index
    %35 = vector.load %arg4[%c0_9, %c0_10] : memref<8x128xf32, #tpu.memory_space<vmem>>, vector<8x128xf32>
    %36 = vector.shape_cast %34 : vector<8x128xf32> to vector<1x8x128xf32>
    %cst_11 = arith.constant dense<0.000000e+00> : vector<8x128xf32>
    %37 = vector.multi_reduction <add>, %36, %cst_11 [0] : vector<1x8x128xf32> to vector<8x128xf32>
    %38 = arith.addf %35, %37 : vector<8x128xf32>
    %c0_12 = arith.constant 0 : index
    %c0_13 = arith.constant 0 : index
    %39 = vector.load %arg4[%c0_12, %c0_13] : memref<8x128xf32, #tpu.memory_space<vmem>>, vector<8x128xf32>
    tpu.vector_store %arg4[%c0_12, %c0_13], %38 {strides = array<i32>} : memref<8x128xf32, #tpu.memory_space<vmem>>, vector<8x128xf32>,
    %c0_i32_14 = arith.constant 0 : i32
    %40 = arith.cmpi eq, %arg0, %c0_i32_14 : i32
    %41 = arith.extui %40 : i1 to i32
    %c0_i32_15 = arith.constant 0 : i32
    %42 = arith.cmpi ne, %41, %c0_i32_15 : i32
    scf.if %42 {
      %c0_16 = arith.constant 0 : index
      %c0_17 = arith.constant 0 : index
      %43 = vector.load %arg4[%c0_16, %c0_17] : memref<8x128xf32, #tpu.memory_space<vmem>>, vector<8x128xf32>
      %44 = vector.shape_cast %43 : vector<8x128xf32> to vector<1x8x128xf32>
      %cst_18 = arith.constant dense<0.000000e+00> : vector<1xf32>
      %45 = vector.multi_reduction <add>, %44, %cst_18 [1, 2] : vector<1x8x128xf32> to vector<1xf32>
      %46 = vector.shape_cast %45 : vector<1xf32> to vector<1x1x1xf32>
      %47 = vector.extract %46[0, 0, 0] : f32 from vector<1x1x1xf32>
      %cst_19 = arith.constant 1.250000e-01 : f32
      %48 = arith.mulf %47, %cst_19 : f32
      %c0_20 = arith.constant 0 : index
      %c0_21 = arith.constant 0 : index
      %49 = memref.load %arg3[%c0_20, %c0_21] : memref<1x1xf32, #tpu.memory_space<smem>>
      memref.store %48, %arg3[%c0_20, %c0_21] : memref<1x1xf32, #tpu.memory_space<smem>>
    } else {
    }
    return
  }
  func.func @transform_0(%arg0: i32) -> (i32, i32) {
    %c0_i32 = arith.constant 0 : i32
    %c0_i32_0 = arith.constant 0 : i32
    return %arg0, %c0_i32 : i32, i32
  }
  func.func @transform_1(%arg0: i32) -> (i32, i32) {
    %c0_i32 = arith.constant 0 : i32
    %c0_i32_0 = arith.constant 0 : i32
    return %arg0, %c0_i32 : i32, i32
  }
  func.func @transform_2(%arg0: i32) -> (i32, i32) {
    %c0_i32 = arith.constant 0 : i32
    %c0_i32_0 = arith.constant 0 : i32
    %c0_i32_1 = arith.constant 0 : i32
    return %c0_i32, %c0_i32_0 : i32, i32
  }
}

</mosaic_0001>

<bundles_post_ra>
// kernel: tpu_custom_call.1
= control target key start
LH: loop header
LB: loop body
LE: loop exit
PB: predicated region body
PF: predicated region fallthrough
CT: control target
= control target key end

     0   :  { %7 = vsyncpa [#allocation4], 0  ;;  %s190_s0 = inlined_call_operand.hbm [shape: f32[8,128], index: 0, kind: input, shape index: {}]   ;;  %s191_s1 = inlined_call_operand.hbm [shape: f32[8,128], index: 1, kind: input, shape index: {}]   ;;  %s192_s2 = inlined_call_operand.hbm [shape: f32[1,1], index: 2, kind: output, shape index: {}]  }
   0x1   :  { %8 = vsyncpa [#allocation7], 0 }
   0x2   :  { %9 = vsyncpa [#allocation5], 0  ;;  %s163_s9 = smov [#allocation3]   ;;  %s164_s11 = smov [#allocation6]  }
   0x3   :  { %s16_s10 = sshll.u32 %s163_s9, 4  ;;  %s26_s12 = sshll.u32 %s164_s11, 4  ;;  %s17_s10 = int_to_ptr.vmem [resolvable:$true] %s16_s10  ;;  %s27_s12 = int_to_ptr.vmem [resolvable:$true] %s26_s12 }
   0x4   :  { %s117_s13 = scalar_lea.vmem %s17_s10, 128  ;;  %p122_p1 = scmp.lt.s32.totalorder %s17_s10, %s17_s10 }
   0x5   :  { %p118_p0 = scmp.ne.s32.totalorder %s17_s10, %s117_s13  ;;  %p123_p2 = scmp.lt.s32.totalorder %s117_s13, %s117_s13 }
   0x7   :  { %p124_p3 = por %p123_p2, %p122_p1 }
   0x9   :  { %p125_p4 = pnand %p124_p3, %p118_p0 }
   0xb   :  { %128 = shalt.err (!%p125_p4)
}
   0xc   :  { %19 = dma.hbm_to_vmem [thread:$0]  %s190_s0, 128, %s17_s10, [#allocation4]  }
   0xd   :  { %s137_s16 = scalar_lea.vmem %s27_s12, 128  ;;  %p142_p6 = scmp.lt.s32.totalorder %s27_s12, %s27_s12 }
   0xe   :  { %p138_p5 = scmp.ne.s32.totalorder %s27_s12, %s137_s16  ;;  %p143_p7 = scmp.lt.s32.totalorder %s137_s16, %s137_s16 }
  0x10   :  { %p144_p8 = por %p143_p7, %p142_p6 }
  0x12   :  { %p145_p9 = pnand %p144_p8, %p138_p5 }
  0x14   :  { %148 = shalt.err (!%p145_p9)
}
  0x15   :  { %29 = dma.hbm_to_vmem [thread:$0]  %s191_s1, 128, %s27_s12, [#allocation7]  }
  0x16   :  { %157 = dma.done.wait [#allocation4], 128  }
  0x17   :  { %158 = vsyncadd [#allocation4], 4294967168 }
  0x18   :  { %159 = dma.done.wait [#allocation7], 128  }
  0x19   :  { %160 = vsyncadd [#allocation7], 4294967168  ;;  %v45_v0 = vlaneseq  ;;  %v41_v6 = vld [vmem:[#allocation3] sm:$0xff]  ;;  %v42_v7 = vld [vmem:[#allocation6] sm:$0xff]  ;;  %s165_s19 = smov [#allocation8]  }
  0x1a   :  { %v43_v10 = vsub.f32 %v41_v6, %v42_v7 }
  0x1b   :  { %v46_v1 = vshrl.u32 %v45_v0, 7  ;;  %v48_v2 = vand.u32 127, %v45_v0 }
  0x1c   :  { %v44_v13 = vmul.f32 %v43_v10, %v43_v10 }
  0x1d   :  { %v52_v3 = vmul.u32 128, %v46_v1 }
  0x1f   :  { %v53_v4 = vadd.s32 %v52_v3, %v48_v2 }
  0x21   :  { %v55_v5 = vsub.s32 0, %v53_v4  ;;  %vm54_vm0 = vcmp.lt.s32.totalorder %v53_v4, 0 }
  0x23   :  { %v103_v8 = vmin.u32 %v55_v5, %v53_v4 }
  0x25   :  { %v58_v9 = vand.u32 1, %v103_v8 }
  0x27   :  { %v59_v11 = vsub.s32 0, %v58_v9 }
  0x29   :  { %v60_v12 = vsel %vm54_vm0, %v59_v11, %v58_v9 }
  0x2a   :  { %vm61_vm1 = vcmp.ne.s32.totalorder %v60_v12, 0  ;;  %vm62_vm2 = vcmp.lt.s32.totalorder %v60_v12, 0  ;;  %v64_v14 = vadd.s32 2, %v60_v12 }
  0x2b   :  { %vm63_vm3 = vmand %vm62_vm2, %vm61_vm1 }
  0x2c   :  { %v65_v15 = vsel %vm63_vm3, %v64_v14, %v60_v12 }
  0x2d   :  { %vm66_vm4 = vcmp.eq.s32.totalorder %v65_v15, 0 }
  0x2e   :  { %v67_v16 = vsel %vm66_vm4, %v44_v13, 0.0 }
  0x2f   :  { %76 = vadd.xlane.f32.xlu0 %v67_v16 }
  0xb8   :  { %v77_v17 = vpop.xlane.xlu0 %76 }
  0xb9   :  { %v78_v18 = vrot.slane %v77_v17, 4 }
  0xbb   :  { %v79_v19 = vadd.f32 %v78_v18, %v77_v17 }
  0xbd   :  { %v80_v20 = vrot.slane %v79_v19, 2 }
  0xbf   :  { %v81_v21 = vadd.f32 %v80_v20, %v79_v19 }
  0xc1   :  { %v82_v22 = vrot.slane %v81_v21, 1 }
  0xc3   :  { %v83_v23 = vadd.f32 %v82_v22, %v81_v21 }
  0xc5   :  { %104 = vpush %v83_v23 }
  0xf6   :  { %s105_s0 = spop %104 }
  0xf7   :  { %s85_s1 = smul.f32 0.125, %s105_s0 }
  0xf9   :  { %87 = sst [smem:[#allocation8]] %s85_s1 }
  0xfa   :  { %95 = dma.smem_to_hbm %s165_s19, 16, %s192_s2, [#allocation5]  }
  0xfb   :  { %161 = dma.done.wait [#allocation5], 16  }
  0xfc   :  { %162 = vsyncadd [#allocation5], 4294967280 }
  0xfd   :  { %99 = sfence }
  0xfe   :  { %100 = vsyncpa [#allocation4], 1 }
  0xff   :  { %101 = vsyncpa [#allocation7], 1 }
 0x100   :  { %102 = vsyncpa [#allocation5], 1 }

</bundles_post_ra>
